<compile_context>
chip_gen: v6e
topology: v6e:2x2x1
jax: 0.10.0
libtpu: 0.0.40
codegen_flags: <defaults>
</compile_context>

<pallas_src>
import jax
import jax.numpy as jnp
from jax.experimental import pallas as pl
from jax.experimental.pallas import tpu as pltpu


def _round_up(n, m):
    return int(pl.cdiv(n, m)) * m


def _vmem_limit_bytes():
    # ~20% headroom for double-buffered tiles + internal scratch.
    # v7x: 64 MiB/TC -> ~51 MiB; v5e/v6e: 128 MiB -> ~102 MiB.
    try:
        cap = pltpu.get_tpu_info().vmem_capacity_bytes
    except Exception:
        cap = 64 * 1024 * 1024
    return int(cap * 4 // 5)


def ffn_kernel(x_ref, w1_ref, b1_ref, w2_ref, b2_ref, o_ref, acc_ref):
    # x_ref:  (TM, E)      model dtype
    # w1_ref: (E, TK_FF)   bf16        b1_ref: (1, TK_FF) f32
    # w2_ref: (TK_FF, E)   bf16        b2_ref: (1, E)     f32
    # o_ref:  (TM, E)      model dtype acc_ref: (TM, E)   f32 scratch
    k = pl.program_id(1)

    @pl.when(k == 0)
    def _():
        acc_ref[...] = jnp.zeros_like(acc_ref)

    # In-kernel cast to the MXU compute dtype (no wrapper-side pad/cast HBM pass).
    x = x_ref[...].astype(w1_ref.dtype)
    h = jnp.dot(x, w1_ref[...], preferred_element_type=jnp.float32)
    h = jnp.maximum(h + b1_ref[...], 0.0)           # bias + ReLU in f32 (v5e-safe)
    # Dropout: identity (eval mode).
    # h downcast to bf16 for the second MXU matmul (documented precision step).
    acc_ref[...] += jnp.dot(h.astype(w2_ref.dtype), w2_ref[...],
                            preferred_element_type=jnp.float32)

    @pl.when(k == pl.num_programs(1) - 1)
    def _():
        o_ref[...] = (acc_ref[...] + b2_ref[...]).astype(o_ref.dtype)


def prepare_params(w1, b1, w2, b2, *, tk_ff=512, compute_dtype=jnp.bfloat16):
    """One-time param prep (do NOT call per forward): pad FF to a tk_ff multiple
    (zero padding is exact: ReLU(0)=0 against zero W2 rows) and cast to bf16."""
    E, FF = w1.shape
    tk_ff = min(_round_up(tk_ff, 256), _round_up(FF, 256))   # 256-aligned for v6e/v7x MXU
    FFp = _round_up(FF, tk_ff)
    w1p = jnp.pad(w1, ((0, 0), (0, FFp - FF))).astype(compute_dtype)
    b1p = jnp.pad(b1, (0, FFp - FF)).reshape(1, FFp).astype(jnp.float32)
    w2p = jnp.pad(w2, ((0, FFp - FF), (0, 0))).astype(compute_dtype)
    b2p = b2.reshape(1, E).astype(jnp.float32)
    return (w1p, b1p, w2p, b2p), tk_ff


def feed_forward(x, params, *, tk_ff, tm=256):
    """x: (B, S, E). params from prepare_params. Returns (B, S, E) in x.dtype."""
    w1p, b1p, w2p, b2p = params
    B, S, E = x.shape
    FFp = w1p.shape[1]
    rows = B * S
    x2d = x.reshape(rows, E)

    # Row tile: MXU-sized by default (>=256 good for v6e/v7x; raise to 512+ on v5e),
    # clamped to the problem, multiple of 8 sublanes.
    tm = int(max(8, min(tm, _round_up(rows, 8))))
    grid_m = int(pl.cdiv(rows, tm))
    # v7x megacore: keep >= 2 row steps when the tile can stay MXU-sized.
    if grid_m == 1 and rows > 256:
        tm = _round_up(int(pl.cdiv(rows, 2)), 8)
        grid_m = int(pl.cdiv(rows, tm))
    grid_k = FFp // tk_ff

    # VMEM (bf16, tm=256, E=4096, tk_ff=512): x 2MiB*2 + W1 4MiB*2 + W2 4MiB*2
    # + out 2MiB*2 + acc 4MiB ≈ 28 MiB -> fits the v7x budget with headroom.
    act_bytes = jnp.dtype(x.dtype).itemsize
    w_bytes = jnp.dtype(w1p.dtype).itemsize
    cost = pl.CostEstimate(
        flops=4 * rows * E * FFp,
        transcendentals=0,
        bytes_accessed=(rows * E * act_bytes            # x in
                        + rows * E * act_bytes          # out (model dtype)
                        + 2 * E * FFp * w_bytes         # W1 + W2
                        + (FFp + E) * 4))               # biases

    out2d = pl.pallas_call(
        ffn_kernel,
        out_shape=jax.ShapeDtypeStruct((rows, E), x.dtype),
        grid_spec=pltpu.PrefetchScalarGridSpec(
            num_scalar_prefetch=0,
            grid=(grid_m, grid_k),
            in_specs=[
                pl.BlockSpec((tm, E), lambda i, k: (i, 0)),       # x rows (constant over k)
                pl.BlockSpec((E, tk_ff), lambda i, k: (0, k)),    # W1 panel
                pl.BlockSpec((1, tk_ff), lambda i, k: (0, k)),    # b1 chunk
                pl.BlockSpec((tk_ff, E), lambda i, k: (k, 0)),    # W2 panel
                pl.BlockSpec((1, E), lambda i, k: (0, 0)),        # b2 (resident)
            ],
            out_specs=pl.BlockSpec((tm, E), lambda i, k: (i, 0)),
            scratch_shapes=[pltpu.VMEM((tm, E), jnp.float32)],    # f32 accumulator
        ),
        compiler_params=pltpu.CompilerParams(
            dimension_semantics=("parallel", "arbitrary"),        # rows megacore-shardable
            vmem_limit_bytes=_vmem_limit_bytes(),
        ),
        cost_estimate=cost,
    )(x2d, w1p, b1p, w2p, b2p)

    return out2d.reshape(B, S, E)


def init_params(key, embed_size, ff_dim, dtype=jnp.float32):
    # Deterministic init mirroring nn.Linear's uniform(-1/sqrt(fan_in), 1/sqrt(fan_in)).
    k1, k2, k3, k4 = jax.random.split(key, 4)
    bound1 = 1.0 / jnp.sqrt(embed_size)
    bound2 = 1.0 / jnp.sqrt(ff_dim)
    w1 = jax.random.uniform(k1, (embed_size, ff_dim), dtype, -bound1, bound1)
    b1 = jax.random.uniform(k2, (ff_dim,), dtype, -bound1, bound1)
    w2 = jax.random.uniform(k3, (ff_dim, embed_size), dtype, -bound2, bound2)
    b2 = jax.random.uniform(k4, (embed_size,), dtype, -bound2, bound2)
    return w1, b1, w2, b2


if __name__ == "__main__":
    embed_size, ff_dim = 32, 64
    B, S = 2, 8

    key = jax.random.PRNGKey(0)
    kx, kp = jax.random.split(key)
    x = jax.random.normal(kx, (B, S, embed_size), jnp.float32)
    w1, b1, w2, b2 = init_params(kp, embed_size, ff_dim)

    params, tk_ff = prepare_params(w1, b1, w2, b2)      # one-time param prep
    out = jax.block_until_ready(feed_forward(x, params, tk_ff=tk_ff))

    # Reference check against plain f32 JAX (eval-mode dropout = identity).
    # Kernel uses bf16 MXU operands with f32 accumulation -> loose tolerance.
    ref = jnp.maximum(x @ w1 + b1, 0.0) @ w2 + b2
    assert out.shape == (B, S, embed_size)
    assert out.dtype == x.dtype
    assert jnp.allclose(out, ref, atol=5e-2, rtol=5e-2), float(jnp.max(jnp.abs(out - ref)))

    print("KERNEL_OK")
</pallas_src>

<mosaic_0001>
module attributes {stable_mosaic.version = 11 : i64} {
  func.func @ffn_kernel(%arg0: i32, %arg1: i32, %arg2: memref<16x32xf32, #tpu.memory_space<vmem>>, %arg3: memref<32x256xbf16, #tpu.memory_space<vmem>>, %arg4: memref<1x256xf32, #tpu.memory_space<vmem>>, %arg5: memref<256x32xbf16, #tpu.memory_space<vmem>>, %arg6: memref<1x32xf32, #tpu.memory_space<vmem>>, %arg7: memref<16x32xf32, #tpu.memory_space<vmem>>, %arg8: memref<16x32xf32, #tpu.memory_space<vmem>>) attributes {dimension_semantics = [#tpu.dimension_semantics<parallel>, #tpu.dimension_semantics<arbitrary>], iteration_bounds = array<i64: 1, 1>, scalar_prefetch = 0 : i64, scratch_operands = 1 : i64, tpu.core_type = #tpu.core_type<tc>, window_params = [{transform_indices = @transform_0, window_bounds = array<i64: 16, 32>}, {transform_indices = @transform_1, window_bounds = array<i64: 32, 256>}, {transform_indices = @transform_2, window_bounds = array<i64: 1, 256>}, {transform_indices = @transform_3, window_bounds = array<i64: 256, 32>}, {pipeline_mode = #tpu.pipeline_mode<synchronous>, transform_indices = @transform_4, window_bounds = array<i64: 1, 32>}, {transform_indices = @transform_5, window_bounds = array<i64: 16, 32>}]} {
    %c0_i32 = arith.constant 0 : i32
    %0 = arith.cmpi eq, %arg1, %c0_i32 : i32
    %1 = arith.extui %0 : i1 to i32
    %c0_i32_0 = arith.constant 0 : i32
    %2 = arith.cmpi ne, %1, %c0_i32_0 : i32
    scf.if %2 {
      %cst_16 = arith.constant 0.000000e+00 : f32
      %21 = vector.broadcast %cst_16 : f32 to vector<16x32xf32>
      %c0_17 = arith.constant 0 : index
      %c0_18 = arith.constant 0 : index
      %22 = vector.load %arg8[%c0_17, %c0_18] : memref<16x32xf32, #tpu.memory_space<vmem>>, vector<16x32xf32>
      tpu.vector_store %arg8[%c0_17, %c0_18], %21 {strides = array<i32>} : memref<16x32xf32, #tpu.memory_space<vmem>>, vector<16x32xf32>,
    } else {
    }
    %c0 = arith.constant 0 : index
    %c0_1 = arith.constant 0 : index
    %3 = vector.load %arg2[%c0, %c0_1] : memref<16x32xf32, #tpu.memory_space<vmem>>, vector<16x32xf32>
    %4 = arith.truncf %3 : vector<16x32xf32> to vector<16x32xbf16>
    %c0_2 = arith.constant 0 : index
    %c0_3 = arith.constant 0 : index
    %5 = vector.load %arg3[%c0_2, %c0_3] : memref<32x256xbf16, #tpu.memory_space<vmem>>, vector<32x256xbf16>
    %cst = arith.constant dense<0.000000e+00> : vector<16x256xf32>
    %6 = tpu.matmul %4, %5, %cst {dimension_numbers = #tpu.dot_dimension_numbers<[1], [0], [0], [1], [0, 0, 1, 1], [], []>} : vector<16x32xbf16>, vector<32x256xbf16>, vector<16x256xf32> -> vector<16x256xf32>
    %c0_4 = arith.constant 0 : index
    %c0_5 = arith.constant 0 : index
    %7 = vector.load %arg4[%c0_4, %c0_5] : memref<1x256xf32, #tpu.memory_space<vmem>>, vector<1x256xf32>
    %8 = vector.broadcast %7 : vector<1x256xf32> to vector<16x256xf32>
    %9 = arith.addf %6, %8 : vector<16x256xf32>
    %cst_6 = arith.constant 0.000000e+00 : f32
    %10 = vector.broadcast %cst_6 : f32 to vector<16x256xf32>
    %11 = arith.maximumf %9, %10 : vector<16x256xf32>
    %c0_7 = arith.constant 0 : index
    %c0_8 = arith.constant 0 : index
    %12 = vector.load %arg8[%c0_7, %c0_8] : memref<16x32xf32, #tpu.memory_space<vmem>>, vector<16x32xf32>
    %13 = arith.truncf %11 : vector<16x256xf32> to vector<16x256xbf16>
    %c0_9 = arith.constant 0 : index
    %c0_10 = arith.constant 0 : index
    %14 = vector.load %arg5[%c0_9, %c0_10] : memref<256x32xbf16, #tpu.memory_space<vmem>>, vector<256x32xbf16>
    %cst_11 = arith.constant dense<0.000000e+00> : vector<16x32xf32>
    %15 = tpu.matmul %13, %14, %cst_11 {dimension_numbers = #tpu.dot_dimension_numbers<[1], [0], [0], [1], [0, 0, 1, 1], [], []>} : vector<16x256xbf16>, vector<256x32xbf16>, vector<16x32xf32> -> vector<16x32xf32>
    %16 = arith.addf %12, %15 : vector<16x32xf32>
    %c0_12 = arith.constant 0 : index
    %c0_13 = arith.constant 0 : index
    %17 = vector.load %arg8[%c0_12, %c0_13] : memref<16x32xf32, #tpu.memory_space<vmem>>, vector<16x32xf32>
    tpu.vector_store %arg8[%c0_12, %c0_13], %16 {strides = array<i32>} : memref<16x32xf32, #tpu.memory_space<vmem>>, vector<16x32xf32>,
    %c0_i32_14 = arith.constant 0 : i32
    %18 = arith.cmpi eq, %arg1, %c0_i32_14 : i32
    %19 = arith.extui %18 : i1 to i32
    %c0_i32_15 = arith.constant 0 : i32
    %20 = arith.cmpi ne, %19, %c0_i32_15 : i32
    scf.if %20 {
      %c0_16 = arith.constant 0 : index
      %c0_17 = arith.constant 0 : index
      %21 = vector.load %arg8[%c0_16, %c0_17] : memref<16x32xf32, #tpu.memory_space<vmem>>, vector<16x32xf32>
      %c0_18 = arith.constant 0 : index
      %c0_19 = arith.constant 0 : index
      %22 = vector.load %arg6[%c0_18, %c0_19] : memref<1x32xf32, #tpu.memory_space<vmem>>, vector<1x32xf32>
      %23 = vector.broadcast %22 : vector<1x32xf32> to vector<16x32xf32>
      %24 = arith.addf %21, %23 : vector<16x32xf32>
      %c0_20 = arith.constant 0 : index
      %c0_21 = arith.constant 0 : index
      %25 = vector.load %arg7[%c0_20, %c0_21] : memref<16x32xf32, #tpu.memory_space<vmem>>, vector<16x32xf32>
      tpu.vector_store %arg7[%c0_20, %c0_21], %24 {strides = array<i32>} : memref<16x32xf32, #tpu.memory_space<vmem>>, vector<16x32xf32>,
    } else {
    }
    return
  }
  func.func @transform_0(%arg0: i32, %arg1: i32) -> (i32, i32) {
    %c0_i32 = arith.constant 0 : i32
    %c0_i32_0 = arith.constant 0 : i32
    return %arg0, %c0_i32 : i32, i32
  }
  func.func @transform_1(%arg0: i32, %arg1: i32) -> (i32, i32) {
    %c0_i32 = arith.constant 0 : i32
    %c0_i32_0 = arith.constant 0 : i32
    return %c0_i32, %arg1 : i32, i32
  }
  func.func @transform_2(%arg0: i32, %arg1: i32) -> (i32, i32) {
    %c0_i32 = arith.constant 0 : i32
    %c0_i32_0 = arith.constant 0 : i32
    return %c0_i32, %arg1 : i32, i32
  }
  func.func @transform_3(%arg0: i32, %arg1: i32) -> (i32, i32) {
    %c0_i32 = arith.constant 0 : i32
    %c0_i32_0 = arith.constant 0 : i32
    return %arg1, %c0_i32 : i32, i32
  }
  func.func @transform_4(%arg0: i32, %arg1: i32) -> (i32, i32) {
    %c0_i32 = arith.constant 0 : i32
    %c0_i32_0 = arith.constant 0 : i32
    %c0_i32_1 = arith.constant 0 : i32
    return %c0_i32, %c0_i32_0 : i32, i32
  }
  func.func @transform_5(%arg0: i32, %arg1: i32) -> (i32, i32) {
    %c0_i32 = arith.constant 0 : i32
    %c0_i32_0 = arith.constant 0 : i32
    return %arg0, %c0_i32 : i32, i32
  }
}

</mosaic_0001>

<bundles_post_ra>
// kernel: tpu_custom_call.1
= control target key start
LH: loop header
LB: loop body
LE: loop exit
PB: predicated region body
PF: predicated region fallthrough
CT: control target
= control target key end

     0   :  { %v421_v2 = vmov 0   ;;  %vm26_vm0 = vcmask 261120   ;;  %s538_s0 = inlined_call_operand.vmem [shape: f32[16,32], index: 0, kind: input, shape index: {}]   ;;  %s539_s1 = inlined_call_operand.vmem [shape: bf16[32,256], index: 1, kind: input, shape index: {}]   ;;  %s540_s2 = inlined_call_operand.vmem [shape: f32[1,256], index: 2, kind: input, shape index: {}]   ;;  %s541_s3 = inlined_call_operand.vmem [shape: bf16[256,32], index: 3, kind: input, shape index: {}]   ;;  %s542_s4 = inlined_call_operand.vmem [shape: f32[1,32], index: 4, kind: input, shape index: {}]   ;;  %s543_s5 = inlined_call_operand.hbm [shape: f32[16,32], index: 5, kind: output, shape index: {}]  }
   0x1   :  { %v377_v0 = vld [vmem:[%s539_s1 + $0x14] ss:$8 sps:$4 sm:$0xff]   ;;  %v379_v1 = vld [vmem:[%s539_s1 + $0x10] ss:$8 sps:$4 sm:$0xff]   ;;  %104 = vmatprep.mubr.bf16.mxu0 %v421_v2  ;;  %v380_v3 = vld [vmem:[%s539_s1 + $0x4] ss:$8 sps:$4 sm:$0xff]  }
   0x2   :  { %84 = vmatprep.subr.bf16.mxu0 %v377_v0  ;;  %v382_v4 = vld [vmem:[%s539_s1] ss:$8 sps:$4 sm:$0xff]   ;;  %v383_v7 = vld [vmem:[%s541_s3 + $0x78] sm:$0xff]   ;;  %v385_v10 = vld [vmem:[%s541_s3 + $0x70] sm:$0xff]  }
   0x3   :  { %v29_v5 = vld [vmem:[%s538_s0] sm:$0xff]  ;;  %85 = vmatpush1.bf16.msra.mxu0 %v379_v1  ;;  %v30_v6 = vld [vmem:[%s538_s0 + $0x8] sm:$0xff]  ;;  %v384_v8 = vld [vmem:[%s541_s3 + $0x38] sm:$0xff]   ;;  %350 = vmatprep.subr.bf16.mxu1 %v383_v7 }
   0x4   :  { %86 = vmatprep.subr.bf16.mxu0 %v380_v3  ;;  %v31_v9 = vpack.c.bf16 %v30_v6, %v29_v5  ;;  %351 = vmatpush3.bf16.msra.mxu1 %v384_v8  ;;  %v386_v11 = vld [vmem:[%s541_s3 + $0x30] sm:$0xff]   ;;  %v387_v12 = vld [vmem:[%s541_s3 + $0x68] sm:$0xff]   ;;  %v389_v14 = vld [vmem:[%s541_s3 + $0x60] sm:$0xff]  }
   0x5   :  { %352 = vmatprep.subr.bf16.mxu1 %v385_v10  ;;  %v388_v13 = vld [vmem:[%s541_s3 + $0x28] sm:$0xff]   ;;  %v390_v15 = vld [vmem:[%s541_s3 + $0x20] sm:$0xff]   ;;  %v391_v16 = vld [vmem:[%s541_s3 + $0x58] sm:$0xff]  }
   0x7   :  { %87 = vmatpush1.bf16.msra.mxu0 %v382_v4 }
   0x8   :  { %353 = vmatpush3.bf16.msra.mxu1 %v386_v11 }
   0x9   :  { %354 = vmatprep.subr.bf16.mxu1 %v387_v12 }
   0xa   :  { %332 = vmatmul.mubr.msk.bf16.vlgmr.msra.gmra.mxu0 %vm26_vm0, %v31_v9 }
   0xc   :  { %355 = vmatpush3.bf16.msra.mxu1 %v388_v13 }
   0xd   :  { %356 = vmatprep.subr.bf16.mxu1 %v389_v14 }
   0xe   :  { %10 = vsyncpa [#allocation4], 0  ;;  %v392_v17 = vld [vmem:[%s541_s3 + $0x18] sm:$0xff]   ;;  %v393_v18 = vld [vmem:[%s541_s3 + $0x50] sm:$0xff]   ;;  %v38_v24 = vlaneseq  ;;  %v422_v45 = vmov 0.0   ;;  %s423_s0 = smov [#allocation3]  }
   0xf   :  { %v394_v19 = vld [vmem:[%s541_s3 + $0x10] sm:$0xff]   ;;  %v395_v20 = vld [vmem:[%s541_s3 + $0x48] sm:$0xff]   ;;  %v397_v22 = vld [vmem:[%s541_s3 + $0x40] sm:$0xff]   ;;  %27 = vst.msk [vmem:[#allocation2] sm:$0xff] %vm26_vm0, %v422_v45  ;;  %s317_s11 = sshll.u32 %s423_s0, 4  ;;  %s318_s11 = int_to_ptr.vmem [resolvable:$true] %s317_s11 }
  0x10   :  { %357 = vmatpush3.bf16.msra.mxu1 %v390_v15  ;;  %v396_v21 = vld [vmem:[%s541_s3 + $0x8] sm:$0xff]   ;;  %v398_v23 = vld [vmem:[%s541_s3] sm:$0xff]   ;;  %v39_v25 = vshrl.u32 %v38_v24, 7  ;;  %28 = vst.msk [vmem:[#allocation2 + $0x8] sm:$0xff] %vm26_vm0, %v422_v45  ;;  %s399_s12 = scalar_lea.vmem %s318_s11, 256  ;;  %p404_p1 = scmp.lt.s32.totalorder %s318_s11, %s318_s11 }
  0x11   :  { %358 = vmatprep.subr.bf16.mxu1 %v391_v16  ;;  %v36_v28 = vld [vmem:[%s540_s2] sm:$0x3]  ;;  %p400_p0 = scmp.ne.s32.totalorder %s318_s11, %s399_s12  ;;  %p405_p2 = scmp.lt.s32.totalorder %s399_s12, %s399_s12 }
  0x12   :  { %v44_v26 = vsub.s32 1, %v39_v25  ;;  %v40_v27 = vsub.s32 0, %v39_v25  ;;  %v349_v56 = vld [vmem:[%s542_s4] ss:$0 sm:$0xff] }
  0x13   :  { %p406_p3 = por %p405_p2, %p404_p1 }
  0x14   :  { %359 = vmatpush3.bf16.msra.mxu1 %v392_v17  ;;  %v45_v30 = vrot.slane %v36_v28, %v44_v26  ;;  %v41_v31 = vrot.slane %v36_v28, %v40_v27 }
  0x15   :  { %360 = vmatprep.subr.bf16.mxu1 %v393_v18  ;;  %p407_p4 = pnand %p406_p3, %p400_p0 }
  0x16   :  { %v119_v47 = vld [vmem:[#allocation2] sm:$0xff] }
  0x17   :  { %v120_v52 = vld [vmem:[#allocation2 + $0x8] sm:$0xff] }
  0x18   :  { %361 = vmatpush3.bf16.msra.mxu1 %v394_v19 }
  0x19   :  { %362 = vmatprep.subr.bf16.mxu1 %v395_v20 }
  0x1c   :  { %363 = vmatpush3.bf16.msra.mxu1 %v396_v21 }
  0x1d   :  { %364 = vmatprep.subr.bf16.mxu1 %v397_v22 }
  0x20   :  { %365 = vmatpush3.bf16.msra.mxu1 %v398_v23 }
  0xca   :  { %v106_v29 = vpop.f32.mrf.mxu0 }
  0xcb   :  { %v107_v36 = vadd.f32 %v106_v29, %v41_v31 }
  0xcc   :  { %v108_v32 = vpop.f32.mrf.mxu0 }
  0xcd   :  { %v109_v34 = vadd.f32 %v108_v32, %v45_v30  ;;  %v115_v42 = vmax.f32 %v107_v36, 0.0 }
  0xce   :  { %v110_v33 = vpop.f32.mrf.mxu0 }
  0xcf   :  { %v111_v35 = vadd.f32 %v110_v33, %v41_v31  ;;  %v116_v40 = vmax.f32 %v109_v34, 0.0 }
  0xd0   :  { %v112_v37 = vpop.f32.mrf.mxu0 }
  0xd1   :  { %v113_v38 = vadd.f32 %v112_v37, %v45_v30  ;;  %v117_v39 = vmax.f32 %v111_v35, 0.0 }
  0xd3   :  { %v118_v41 = vmax.f32 %v113_v38, 0.0  ;;  %v121_v44 = vpack.c.bf16 %v117_v39, %v115_v42 }
  0xd5   :  { %v122_v43 = vpack.c.bf16 %v118_v41, %v116_v40 }
  0xd7   :  { %283 = vmatprep.mubr.bf16.mxu1 %v122_v43 }
  0xd8   :  { %284 = vmatmul.mubr.bf16.vlgmr.msra.gmra.mxu1 %v121_v44 }
 0x198   :  { %v366_v46 = vpop.f32.mrf.mxu1 }
 0x19a   :  { %v367_v48 = vpop.f32.mrf.mxu1 }
 0x19b   :  { %v368_v49 = vadd.f32 %v367_v48, %v366_v46 }
 0x19c   :  { %v369_v50 = vpop.f32.mrf.mxu1 }
 0x19d   :  { %v292_v51 = vadd.f32 %v368_v49, %v119_v47 }
 0x19e   :  { %v370_v53 = vpop.f32.mrf.mxu1 }
 0x19f   :  { %294 = vst.msk [vmem:[#allocation2] sm:$0xff] %vm26_vm0, %v292_v51  ;;  %v371_v54 = vadd.f32 %v370_v53, %v369_v50 }
 0x1a1   :  { %v293_v55 = vadd.f32 %v371_v54, %v120_v52 }
 0x1a3   :  { %295 = vst.msk [vmem:[#allocation2 + $0x8] sm:$0xff] %vm26_vm0, %v293_v55 }
 0x1a6   :  { %v299_v57 = vld [vmem:[#allocation2] sm:$0xff] }
 0x1a7   :  { %v308_v58 = vadd.f32 %v349_v56, %v299_v57 }
 0x1a9   :  { %310 = vst.msk [vmem:[#allocation3] sm:$0xff] %vm26_vm0, %v308_v58 }
 0x1aa   :  { %v300_v59 = vld [vmem:[#allocation2 + $0x8] sm:$0xff] }
 0x1ab   :  { %v309_v60 = vadd.f32 %v349_v56, %v300_v59 }
 0x1ad   :  { %311 = vst.msk [vmem:[#allocation3 + $0x8] sm:$0xff] %vm26_vm0, %v309_v60 }
 0x1ae   :  { %410 = shalt.err (!%p407_p4)
}
 0x1af   :  { %s424_s13 = smov 128   ;;  %s425_s4 = smov 8  }
 0x1b0   :  { %323 = dma.vmem_to_hbm [thread:$0]  %s318_s11, 256, %s543_s5, [#allocation4], %s424_s13, %s424_s13, %s425_s4  }
 0x1b1   :  { %419 = dma.done.wait [#allocation4], 256  }
 0x1b2   :  { %420 = vsyncadd [#allocation4], 4294967040 }
 0x1b3   :  { %327 = vsyncpa [#allocation4], 1 }

</bundles_post_ra>
